<compile_context>
chip_gen: v6e
topology: v6e:2x2x1
jax: 0.10.0
libtpu: 0.0.40
codegen_flags: <defaults>
</compile_context>

<pallas_src>
import functools
import math

import numpy as np
import jax
import jax.numpy as jnp
from jax import lax
from jax.experimental import pallas as pl
from jax.experimental.pallas import tpu as pltpu

BN_EPS = 1e-5  # torch.nn.BatchNorm2d default


def _down_block_kernel(x_ref, w_ref, shift_ref, pool_ref, o_ref, *, offsets):
    """One batch group (G images) per grid step.

    x_ref    : (Cp, G*Npad)  f32   zero-padded inputs, images packed along lanes
    w_ref    : (C_out, 9*Cp) bf16  conv taps with BN scale folded in
    shift_ref: (C_out, 1)    f32   folded conv-bias + BN shift
    pool_ref : (G*Npad, G*H2*W2) bf16  block-diagonal 2x2 avg-pool matrix
    o_ref    : (C_out, G*H2*W2)  f32   lane-dense output tile
    """
    x = x_ref[...]                      # (Cp, Wtot) f32
    wtot = x.shape[-1]

    # 9 statically-shifted views of the packed image, produced with XLU rolls
    # (no unaligned lane slices).  Wrapped / cross-image lanes only ever land in
    # columns that the pool matrix multiplies by zero.
    pieces = [x if off == 0 else pltpu.roll(x, wtot - off, 1) for off in offsets]

    # Stack along sublanes -> single K = 9*Cp MXU matmul (one weight load).
    xstack = jnp.concatenate(pieces, axis=0).astype(jnp.bfloat16)   # (9*Cp, Wtot)
    acc = jnp.dot(w_ref[...], xstack,
                  preferred_element_type=jnp.float32)               # (C_out, Wtot) f32

    # Folded conv-bias + BatchNorm shift, then ReLU (f32 VPU math).
    y = jnp.maximum(acc + shift_ref[...], 0.0)

    # 2x2 average pool as one matmul; also drops pad / row-wrap garbage columns.
    pooled = jnp.dot(y.astype(jnp.bfloat16), pool_ref[...],
                     preferred_element_type=jnp.float32)            # (C_out, G*H2*W2)
    o_ref[...] = pooled.astype(o_ref.dtype)


def _pick_group(B, hw2):
    """Images per grid step G: B % G == 0, output block lane width G*hw2 is a
    multiple of 128 (unless the block covers the full batch), and the grid
    length B//G is preferably even (v7x has 2 TensorCores)."""
    lane_q = 128 // math.gcd(hw2, 128)   # smallest G making G*hw2 % 128 == 0
    best = None
    for g in range(1, B + 1):
        if B % g:
            continue
        if g % lane_q and g != B:
            continue
        key = ((B // g) % 2 == 0, g)     # prefer even grid, then larger G
        if best is None or key > best[0]:
            best = (key, g)
    return best[1]


def _pool_matrix(H, W, G, Npad):
    """(G*Npad, G*(H//2)*(W//2)) block-diagonal matrix: column g*H2*W2 + y2*W2 + x2
    averages the 2x2 window of image g's conv output stored in flattened
    padded-width layout (local column j <-> padded pixel (j // (W+2), j % (W+2)))."""
    Wp = W + 2
    H2, W2 = H // 2, W // 2
    P = np.zeros((G * Npad, G * H2 * W2), np.float32)
    for g in range(G):
        for y2 in range(H2):
            for x2 in range(W2):
                col = g * H2 * W2 + y2 * W2 + x2
                for r in range(2):
                    for s in range(2):
                        P[g * Npad + (2 * y2 + r) * Wp + (2 * x2 + s), col] = 0.25
    return jnp.asarray(P, dtype=jnp.bfloat16)   # 0.25 is exact in bf16


def down_block2d(x_nchw, params):
    """x_nchw: (B, C_in, H, W) float32 -> (B, C_out, H//2, W//2) float32."""
    B, C_in, H, W = x_nchw.shape
    assert H % 2 == 0 and W % 2 == 0, "AvgPool2d(2) needs even spatial dims"
    C_out = params["conv_w"].shape[0]
    H2, W2 = H // 2, W // 2
    HW2 = H2 * W2
    Wp = W + 2
    Nflat = (H + 2) * (W + 2)
    Npad = ((Nflat + 127) // 128) * 128          # per-image lane stride (vreg aligned)
    Cp = ((C_in + 7) // 8) * 8                   # channels padded to f32 sublane quantum

    G = _pick_group(B, HW2)                      # images per grid step
    steps = B // G
    Wtot = G * Npad

    # ---- input: zero-pad spatially, flatten, pad channels & lane stride, and
    #      pack images along the lane axis (channel-major, tiny wrapper-side
    #      layout plumbing only) ----
    xp = jnp.pad(x_nchw.astype(jnp.float32), ((0, 0), (0, 0), (1, 1), (1, 1)))
    xp = xp.reshape(B, C_in, Nflat)
    xp = jnp.pad(xp, ((0, 0), (0, Cp - C_in), (0, Npad - Nflat)))
    xpacked = jnp.transpose(xp, (1, 0, 2)).reshape(Cp, B * Npad)

    # ---- fold eval-mode BN: scale into the conv weights, the rest into a shift ----
    inv_std = 1.0 / jnp.sqrt(params["bn_var"] + BN_EPS)
    scale = params["bn_w"] * inv_std                                        # (C_out,)
    shift = ((params["conv_b"] - params["bn_mean"]) * scale + params["bn_b"])
    shift = shift.reshape(C_out, 1).astype(jnp.float32)

    w = params["conv_w"].astype(jnp.float32) * scale[:, None, None, None]   # (C_out,C_in,3,3)
    w = jnp.transpose(w, (0, 2, 3, 1))                                      # (C_out,3,3,C_in)
    w = jnp.pad(w, ((0, 0), (0, 0), (0, 0), (0, Cp - C_in)))
    w_taps = w.reshape(C_out, 9 * Cp).astype(jnp.bfloat16)                  # tap-major K

    P = _pool_matrix(H, W, G, Npad)                                         # (Wtot, G*HW2)

    offsets = tuple(dy * Wp + dx for dy in range(3) for dx in range(3))
    kernel = functools.partial(_down_block_kernel, offsets=offsets)

    out = pl.pallas_call(
        kernel,
        out_shape=jax.ShapeDtypeStruct((C_out, B * HW2), jnp.float32),
        grid_spec=pltpu.PrefetchScalarGridSpec(
            num_scalar_prefetch=0,
            grid=(steps,),
            in_specs=[
                pl.BlockSpec((Cp, Wtot), lambda b: (0, b)),          # packed images
                pl.BlockSpec((C_out, 9 * Cp), lambda b: (0, 0)),     # folded conv taps
                pl.BlockSpec((C_out, 1), lambda b: (0, 0)),          # folded shift
                pl.BlockSpec((Wtot, G * HW2), lambda b: (0, 0)),     # pool matrix
            ],
            out_specs=pl.BlockSpec((C_out, G * HW2), lambda b: (0, b)),
        ),
        compiler_params=pltpu.CompilerParams(
            dimension_semantics=("parallel",)),
    )(xpacked, w_taps, shift, P)

    out = out.reshape(C_out, B, H2, W2)
    return jnp.transpose(out, (1, 0, 2, 3))


def _reference(x, params):
    """Pure-JAX reference mirroring the PyTorch forward (eval mode, f32)."""
    out = lax.conv_general_dilated(
        x, params["conv_w"], window_strides=(1, 1),
        padding=((1, 1), (1, 1)),
        dimension_numbers=("NCHW", "OIHW", "NCHW"))
    out = out + params["conv_b"][None, :, None, None]
    mean = params["bn_mean"][None, :, None, None]
    var = params["bn_var"][None, :, None, None]
    g = params["bn_w"][None, :, None, None]
    b = params["bn_b"][None, :, None, None]
    out = (out - mean) / jnp.sqrt(var + BN_EPS) * g + b
    out = jnp.maximum(out, 0.0)
    B, C, H, W = out.shape
    return out.reshape(B, C, H // 2, 2, W // 2, 2).mean(axis=(3, 5))


if __name__ == "__main__":
    # Small shapes consistent with DownBlock2d: in_features=4, out_features=8.
    B, C_in, C_out, H, W = 2, 4, 8, 16, 16

    key = jax.random.PRNGKey(0)
    ks = jax.random.split(key, 6)
    fan_in = C_in * 3 * 3
    bound = 1.0 / math.sqrt(fan_in)

    params = {
        "conv_w": jax.random.uniform(ks[0], (C_out, C_in, 3, 3), jnp.float32,
                                     -bound, bound),
        "conv_b": jax.random.uniform(ks[1], (C_out,), jnp.float32, -bound, bound),
        "bn_w": jax.random.uniform(ks[2], (C_out,), jnp.float32, 0.5, 1.5),
        "bn_b": jax.random.uniform(ks[3], (C_out,), jnp.float32, -0.5, 0.5),
        "bn_mean": 0.1 * jax.random.normal(ks[4], (C_out,), jnp.float32),
        "bn_var": jax.random.uniform(ks[5], (C_out,), jnp.float32, 0.5, 1.5),
    }

    x = jax.random.normal(jax.random.PRNGKey(1), (B, C_in, H, W), jnp.float32)

    out = jax.block_until_ready(down_block2d(x, params))

    ref = _reference(x, params)
    assert out.shape == (B, C_out, H // 2, W // 2)
    # bf16 matmul operands (f32 accumulation) -> tolerance relaxed vs the pure-f32 version.
    assert jnp.allclose(out, ref, atol=3e-2, rtol=3e-2), "mismatch vs reference"

    print("KERNEL_OK")
</pallas_src>

<mosaic_0001>
module attributes {stable_mosaic.version = 11 : i64} {
  func.func @_down_block_kernel(%arg0: i32, %arg1: memref<8x768xf32, #tpu.memory_space<vmem>>, %arg2: memref<8x72xbf16, #tpu.memory_space<vmem>>, %arg3: memref<8x1xf32, #tpu.memory_space<vmem>>, %arg4: memref<768x128xbf16, #tpu.memory_space<vmem>>, %arg5: memref<8x128xf32, #tpu.memory_space<vmem>>) attributes {dimension_semantics = [#tpu.dimension_semantics<parallel>], iteration_bounds = array<i64: 1>, scalar_prefetch = 0 : i64, scratch_operands = 0 : i64, tpu.core_type = #tpu.core_type<tc>, window_params = [{transform_indices = @transform_0, window_bounds = array<i64: 8, 768>}, {pipeline_mode = #tpu.pipeline_mode<synchronous>, transform_indices = @transform_1, window_bounds = array<i64: 8, 72>}, {pipeline_mode = #tpu.pipeline_mode<synchronous>, transform_indices = @transform_2, window_bounds = array<i64: 8, 1>}, {pipeline_mode = #tpu.pipeline_mode<synchronous>, transform_indices = @transform_3, window_bounds = array<i64: 768, 128>}, {transform_indices = @transform_4, window_bounds = array<i64: 8, 128>}]} {
    %c0 = arith.constant 0 : index
    %c0_0 = arith.constant 0 : index
    %0 = vector.load %arg1[%c0, %c0_0] : memref<8x768xf32, #tpu.memory_space<vmem>>, vector<8x768xf32>
    %c767_i32 = arith.constant 767 : i32
    %1 = tpu.dynamic_rotate %0 by %c767_i32 dim 1 : vector<8x768xf32>, i32 -> vector<8x768xf32>
    %c766_i32 = arith.constant 766 : i32
    %2 = tpu.dynamic_rotate %0 by %c766_i32 dim 1 : vector<8x768xf32>, i32 -> vector<8x768xf32>
    %c750_i32 = arith.constant 750 : i32
    %3 = tpu.dynamic_rotate %0 by %c750_i32 dim 1 : vector<8x768xf32>, i32 -> vector<8x768xf32>
    %c749_i32 = arith.constant 749 : i32
    %4 = tpu.dynamic_rotate %0 by %c749_i32 dim 1 : vector<8x768xf32>, i32 -> vector<8x768xf32>
    %c748_i32 = arith.constant 748 : i32
    %5 = tpu.dynamic_rotate %0 by %c748_i32 dim 1 : vector<8x768xf32>, i32 -> vector<8x768xf32>
    %c732_i32 = arith.constant 732 : i32
    %6 = tpu.dynamic_rotate %0 by %c732_i32 dim 1 : vector<8x768xf32>, i32 -> vector<8x768xf32>
    %c731_i32 = arith.constant 731 : i32
    %7 = tpu.dynamic_rotate %0 by %c731_i32 dim 1 : vector<8x768xf32>, i32 -> vector<8x768xf32>
    %c730_i32 = arith.constant 730 : i32
    %8 = tpu.dynamic_rotate %0 by %c730_i32 dim 1 : vector<8x768xf32>, i32 -> vector<8x768xf32>
    %9 = tpu.concatenate %0, %1, %2, %3, %4, %5, %6, %7, %8 in 0 : vector<8x768xf32>, vector<8x768xf32>, vector<8x768xf32>, vector<8x768xf32>, vector<8x768xf32>, vector<8x768xf32>, vector<8x768xf32>, vector<8x768xf32>, vector<8x768xf32> -> vector<72x768xf32>
    %10 = arith.truncf %9 : vector<72x768xf32> to vector<72x768xbf16>
    %c0_1 = arith.constant 0 : index
    %c0_2 = arith.constant 0 : index
    %11 = vector.load %arg2[%c0_1, %c0_2] : memref<8x72xbf16, #tpu.memory_space<vmem>>, vector<8x72xbf16>
    %cst = arith.constant dense<0.000000e+00> : vector<8x768xf32>
    %12 = tpu.matmul %11, %10, %cst {dimension_numbers = #tpu.dot_dimension_numbers<[1], [0], [0], [1], [0, 0, 1, 1], [], []>} : vector<8x72xbf16>, vector<72x768xbf16>, vector<8x768xf32> -> vector<8x768xf32>
    %c0_3 = arith.constant 0 : index
    %c0_4 = arith.constant 0 : index
    %13 = vector.load %arg3[%c0_3, %c0_4] : memref<8x1xf32, #tpu.memory_space<vmem>>, vector<8x1xf32>
    %14 = vector.broadcast %13 : vector<8x1xf32> to vector<8x768xf32>
    %15 = arith.addf %12, %14 : vector<8x768xf32>
    %cst_5 = arith.constant 0.000000e+00 : f32
    %16 = vector.broadcast %cst_5 : f32 to vector<8x768xf32>
    %17 = arith.maximumf %15, %16 : vector<8x768xf32>
    %18 = arith.truncf %17 : vector<8x768xf32> to vector<8x768xbf16>
    %c0_6 = arith.constant 0 : index
    %c0_7 = arith.constant 0 : index
    %19 = vector.load %arg4[%c0_6, %c0_7] : memref<768x128xbf16, #tpu.memory_space<vmem>>, vector<768x128xbf16>
    %cst_8 = arith.constant dense<0.000000e+00> : vector<8x128xf32>
    %20 = tpu.matmul %18, %19, %cst_8 {dimension_numbers = #tpu.dot_dimension_numbers<[1], [0], [0], [1], [0, 0, 1, 1], [], []>} : vector<8x768xbf16>, vector<768x128xbf16>, vector<8x128xf32> -> vector<8x128xf32>
    %c0_9 = arith.constant 0 : index
    %c0_10 = arith.constant 0 : index
    %21 = vector.load %arg5[%c0_9, %c0_10] : memref<8x128xf32, #tpu.memory_space<vmem>>, vector<8x128xf32>
    tpu.vector_store %arg5[%c0_9, %c0_10], %20 {strides = array<i32>} : memref<8x128xf32, #tpu.memory_space<vmem>>, vector<8x128xf32>,
    return
  }
  func.func @transform_0(%arg0: i32) -> (i32, i32) {
    %c0_i32 = arith.constant 0 : i32
    %c0_i32_0 = arith.constant 0 : i32
    return %c0_i32, %arg0 : i32, i32
  }
  func.func @transform_1(%arg0: i32) -> (i32, i32) {
    %c0_i32 = arith.constant 0 : i32
    %c0_i32_0 = arith.constant 0 : i32
    %c0_i32_1 = arith.constant 0 : i32
    return %c0_i32, %c0_i32_0 : i32, i32
  }
  func.func @transform_2(%arg0: i32) -> (i32, i32) {
    %c0_i32 = arith.constant 0 : i32
    %c0_i32_0 = arith.constant 0 : i32
    %c0_i32_1 = arith.constant 0 : i32
    return %c0_i32, %c0_i32_0 : i32, i32
  }
  func.func @transform_3(%arg0: i32) -> (i32, i32) {
    %c0_i32 = arith.constant 0 : i32
    %c0_i32_0 = arith.constant 0 : i32
    %c0_i32_1 = arith.constant 0 : i32
    return %c0_i32, %c0_i32_0 : i32, i32
  }
  func.func @transform_4(%arg0: i32) -> (i32, i32) {
    %c0_i32 = arith.constant 0 : i32
    %c0_i32_0 = arith.constant 0 : i32
    return %c0_i32, %arg0 : i32, i32
  }
}

</mosaic_0001>

<bundles_post_ra>
// kernel: tpu_custom_call.1
= control target key start
LH: loop header
LB: loop body
LE: loop exit
PB: predicated region body
PF: predicated region fallthrough
CT: control target
= control target key end

     0   :  { %9 = vsyncpa [#allocation3], 0  ;;  %s1596_s0 = inlined_call_operand.hbm [shape: f32[8,768], index: 0, kind: input, shape index: {}]   ;;  %s1597_s1 = inlined_call_operand.vmem [shape: bf16[8,72], index: 1, kind: input, shape index: {}]   ;;  %s1598_s2 = inlined_call_operand.vmem [shape: f32[8,1], index: 2, kind: input, shape index: {}]   ;;  %s1599_s3 = inlined_call_operand.hbm [shape: bf16[768,128], index: 3, kind: input, shape index: {}]   ;;  %s1600_s4 = inlined_call_operand.hbm [shape: f32[8,128], index: 4, kind: output, shape index: {}]  }
   0x1   :  { %10 = vsyncpa [#allocation6], 0 }
   0x2   :  { %11 = vsyncpa [#allocation4], 0  ;;  %s1256_s15 = smov [#allocation2]   ;;  %s1257_s17 = smov [#allocation5]  }
   0x3   :  { %s18_s16 = sshll.u32 %s1256_s15, 4  ;;  %s31_s18 = sshll.u32 %s1257_s17, 4  ;;  %s19_s16 = int_to_ptr.vmem [resolvable:$true] %s18_s16  ;;  %s32_s18 = int_to_ptr.vmem [resolvable:$true] %s31_s18 }
   0x4   :  { %s1198_s19 = scalar_lea.vmem %s19_s16, 768  ;;  %p1203_p1 = scmp.lt.s32.totalorder %s19_s16, %s19_s16 }
   0x5   :  { %p1199_p0 = scmp.ne.s32.totalorder %s19_s16, %s1198_s19  ;;  %p1204_p2 = scmp.lt.s32.totalorder %s1198_s19, %s1198_s19 }
   0x7   :  { %p1205_p3 = por %p1204_p2, %p1203_p1 }
   0x9   :  { %p1206_p4 = pnand %p1205_p3, %p1199_p0 }
   0xb   :  { %1209 = shalt.err (!%p1206_p4)
}
   0xc   :  { %21 = dma.hbm_to_vmem [thread:$0]  %s1596_s0, 768, %s19_s16, [#allocation3]  }
   0xd   :  { %s1218_s22 = scalar_lea.vmem %s32_s18, 6144  ;;  %p1223_p6 = scmp.lt.s32.totalorder %s32_s18, %s32_s18 }
   0xe   :  { %p1219_p5 = scmp.ne.s32.totalorder %s32_s18, %s1218_s22  ;;  %p1224_p7 = scmp.lt.s32.totalorder %s1218_s22, %s1218_s22 }
  0x10   :  { %p1225_p8 = por %p1224_p7, %p1223_p6 }
  0x12   :  { %p1226_p9 = pnand %p1225_p8, %p1219_p5 }
  0x14   :  { %1229 = shalt.err (!%p1226_p9)
}
  0x15   :  { %s1258_s23 = smov 64   ;;  %s1259_s24 = smov 4  }
  0x16   :  { %37 = dma.hbm_to_vmem [thread:$0]  %s1599_s3, 6144, %s32_s18, [#allocation6], %s1258_s23, %s1258_s23, %s1259_s24  }
  0x17   :  { %1250 = dma.done.wait [#allocation3], 768  }
  0x18   :  { %1251 = vsyncadd [#allocation3], 4294966528 }
  0x19   :  { %1252 = dma.done.wait [#allocation6], 6144  }
  0x1a   :  { %1253 = vsyncadd [#allocation6], 4294961152  ;;  %v1301_v0 = vld [vmem:[#allocation2 + $0x8] sm:$0xff]  ;;  %v1303_v1 = vld [vmem:[#allocation2 + $0x10] sm:$0xff]  ;;  %s1260_s0 = smov 92   ;;  %s1261_s3 = smov 90   ;;  %v63_v13 = vlaneseq }
  0x1b   :  { %v1305_v2 = vld [vmem:[#allocation2] sm:$0xff]  ;;  %v1065_v3 = vpack.i.bf16 %v1303_v1, %v1301_v0  ;;  %v1311_v5 = vld [vmem:[#allocation2 + $0x18] sm:$0xff]  ;;  %s1262_s27 = smov 91   ;;  %s1263_s28 = smov 108   ;;  %v1330_v8 = vld [vmem:[#allocation2 + $0x28] sm:$0xff]  ;;  %v1267_v9 = vmov 0  }
  0x1c   :  { %v1055_v4 = vpack.i.bf16 %v1301_v0, %v1305_v2  ;;  %v1060_v6 = vpack.i.bf16 %v1311_v5, %v1303_v1  ;;  %s1264_s29 = smov 109   ;;  %s1265_s30 = smov 110   ;;  %v1328_v7 = vld [vmem:[#allocation2 + $0x20] sm:$0xff]  ;;  %297 = vmatprep.mubr.bf16.mxu0 %v1267_v9  ;;  %338 = vmatprep.mubr.bf16.mxu1 %v1267_v9  ;;  %v1363_v14 = vand.u32 127, %v63_v13  ;;  %vm246_vm3 = vcmask 1043456  }
  0x1d   :  { %1066 = vrot.lane.b32.xlu1 %v1065_v3, %s1260_s0  ;;  %s1266_s5 = smov 126   ;;  %1141 = vset.pattern.permute.xlu0 %v1267_v9  ;;  %s1268_s6 = smov 127   ;;  %v1105_v10 = vpack.i.bf16 %v1328_v7, %v1311_v5  ;;  %v1100_v11 = vpack.i.bf16 %v1330_v8, %v1328_v7  ;;  %v236_v12 = vld [vmem:[%s1598_s2] sm:$0xff]  ;;  %vm242_vm9 = vcmask 588800  }
  0x1e   :  { %1056 = vrot.lane.b32.xlu0 %v1055_v4, %s1261_s3  ;;  %1140 = vset.pattern.permute.xlu1 %v1267_v9  ;;  %vm198_vm0 = vcmp.lt.s32.totalorder %v1363_v14, 90  ;;  %vm179_vm1 = vcmp.lt.s32.totalorder %v1363_v14, 91  ;;  %vm160_vm2 = vcmp.lt.s32.totalorder %v1363_v14, 92  ;;  %vm141_vm4 = vcmp.lt.s32.totalorder %v1363_v14, 108 }
  0x1f   :  { %vm122_vm5 = vcmp.lt.s32.totalorder %v1363_v14, 109  ;;  %vm103_vm6 = vcmp.lt.s32.totalorder %v1363_v14, 110  ;;  %vm84_vm7 = vcmp.lt.s32.totalorder %v1363_v14, 126  ;;  %vm65_vm8 = vcmp.lt.s32.totalorder %v1363_v14, 127  ;;  %v1146_v14 = vld [vmem:[#allocation5 + $0x68] sm:$0xff]  }
  0x21   :  { %1071 = vrot.lane.b32.xlu1 %v1065_v3, %s1262_s27 }
  0x22   :  { %1061 = vrot.lane.b32.xlu0 %v1060_v6, %s1261_s3 }
  0x25   :  { %167 = vrot.lane.b32.xlu1 %v1305_v2, %s1262_s27 }
  0x26   :  { %148 = vrot.lane.b32.xlu0 %v1305_v2, %s1260_s0 }
  0x29   :  { %1081 = vrot.lane.b32.xlu1 %v1065_v3, %s1263_s28 }
  0x2a   :  { %1076 = vrot.lane.b32.xlu0 %v1065_v3, %s1264_s29 }
  0x2d   :  { %129 = vrot.lane.b32.xlu1 %v1305_v2, %s1263_s28 }
  0x2e   :  { %110 = vrot.lane.b32.xlu0 %v1305_v2, %s1264_s29 }
  0x31   :  { %1091 = vrot.lane.b32.xlu1 %v1065_v3, %s1265_s30 }
  0x32   :  { %1086 = vrot.lane.b32.xlu0 %v1065_v3, %s1266_s5 }
  0x35   :  { %91 = vrot.lane.b32.xlu1 %v1305_v2, %s1265_s30 }
  0x36   :  { %72 = vrot.lane.b32.xlu0 %v1305_v2, %s1266_s5 }
  0x39   :  { %51 = vrot.lane.b32.xlu1 %v1305_v2, %s1268_s6 }
  0x3a   :  { %1096 = vrot.lane.b32.xlu0 %v1065_v3, %s1268_s6 }
  0x3d   :  { %1106 = vrot.lane.b32.xlu1 %v1105_v10, %s1260_s0 }
  0x3e   :  { %1101 = vrot.lane.b32.xlu0 %v1100_v11, %s1261_s3 }
  0x41   :  { %158 = vrot.lane.b32.xlu1 %v1330_v8, %s1260_s0 }
  0x42   :  { %1111 = vrot.lane.b32.xlu0 %v1105_v10, %s1262_s27 }
  0x45   :  { %1116 = vrot.lane.b32.xlu1 %v1105_v10, %s1264_s29 }
  0x46   :  { %177 = vrot.lane.b32.xlu0 %v1330_v8, %s1262_s27 }
  0x49   :  { %120 = vrot.lane.b32.xlu1 %v1330_v8, %s1264_s29 }
  0x4a   :  { %1121 = vrot.lane.b32.xlu0 %v1105_v10, %s1263_s28 }
  0x4d   :  { %1126 = vrot.lane.b32.xlu1 %v1105_v10, %s1266_s5 }
  0x4e   :  { %139 = vrot.lane.b32.xlu0 %v1330_v8, %s1263_s28 }
  0x51   :  { %82 = vrot.lane.b32.xlu1 %v1330_v8, %s1266_s5 }
  0x52   :  { %1131 = vrot.lane.b32.xlu0 %v1105_v10, %s1265_s30 }
  0x55   :  { %1136 = vrot.lane.b32.xlu1 %v1105_v10, %s1268_s6 }
  0x56   :  { %101 = vrot.lane.b32.xlu0 %v1330_v8, %s1265_s30 }
  0x59   :  { %239 = vperm.xlu1 %1140, %v236_v12  }
  0x5a   :  { %61 = vrot.lane.b32.xlu0 %v1330_v8, %s1268_s6 }
  0x8f   :  { %v1365_v15 = vpop.permute.xlu1 %1066 }
  0x90   :  { %v1367_v16 = vpop.permute.xlu0 %1056  ;;  %v1069_v20 = vunpack.i.h.bf16 %v1365_v15  ;;  %v1068_v23 = vunpack.i.l.bf16 %v1365_v15 }
  0x91   :  { %v1059_v17 = vunpack.i.h.bf16 %v1367_v16  ;;  %v1058_v18 = vunpack.i.l.bf16 %v1367_v16 }
  0x92   :  { %v164_v35 = vsel %vm160_vm2, %v1068_v23, %v1069_v20 }
  0x93   :  { %v203_v19 = vsel %vm198_vm0, %v1058_v18, %v1059_v17  ;;  %v1377_v21 = vpop.permute.xlu1 %1071 }
  0x94   :  { %v1379_v22 = vpop.permute.xlu0 %1061  ;;  %v1074_v24 = vunpack.i.h.bf16 %v1377_v21  ;;  %v1073_v25 = vunpack.i.l.bf16 %v1377_v21  ;;  %v229_v27 = vpack.c.bf16 %v203_v19, %v203_v19 }
  0x95   :  { %v1063_v26 = vunpack.i.l.bf16 %v1379_v22  ;;  %v1064_v10 = vunpack.i.h.bf16 %v1379_v22 }
  0x96   :  { %v183_v29 = vsel %vm179_vm1, %v1073_v25, %v1074_v24  ;;  %v248_v36 = vsel %vm246_vm3, %v229_v27, 0 }
  0x97   :  { %v202_v28 = vsel %vm198_vm0, %v1059_v17, %v1063_v26  ;;  %v1395_v30 = vpop.permute.xlu1 %167  ;;  %v224_v37 = vpack.c.bf16 %v183_v29, %v164_v35 }
  0x98   :  { %v1397_v31 = vpop.permute.xlu0 %148  ;;  %v230_v32 = vpack.c.bf16 %v202_v28, %v202_v28  ;;  %v184_v33 = vsel %vm179_vm1, %v1395_v30, %v1073_v25  ;;  %v201_v25 = vsel %vm198_vm0, %v1063_v26, %v1064_v10  ;;  %v1495_v26 = vld [vmem:[%s1597_s1] sm:$0xf]  ;;  %s1269_s1 = smov [#allocation7]  }
  0x99   :  { %v165_v34 = vsel %vm160_vm2, %v1397_v31, %v1068_v23  ;;  %s911_s10 = sshll.u32 %s1269_s1, 4  ;;  %s912_s10 = int_to_ptr.vmem [resolvable:$true] %s911_s10 }
  0x9a   :  { %921 = vmatprep.subr.msk.bf16.mxu0 %vm246_vm3, %v230_v32  ;;  %v223_v38 = vpack.c.bf16 %v184_v33, %v165_v34  ;;  %s1230_s11 = scalar_lea.vmem %s912_s10, 128  ;;  %p1235_p11 = scmp.lt.s32.totalorder %s912_s10, %s912_s10 }
  0x9b   :  { %272 = vmatpush1.bf16.msra.mxu0 %v248_v36  ;;  %v1411_v39 = vpop.permute.xlu1 %1081  ;;  %p1231_p10 = scmp.ne.s32.totalorder %s912_s10, %s1230_s11  ;;  %p1236_p12 = scmp.lt.s32.totalorder %s1230_s11, %s1230_s11 }
  0x9c   :  { %v1413_v40 = vpop.permute.xlu0 %1076  ;;  %273 = vmatprep.subr.bf16.mxu0 %v224_v37  ;;  %v1084_v41 = vunpack.i.h.bf16 %v1411_v39  ;;  %v1083_v42 = vunpack.i.l.bf16 %v1411_v39  ;;  %v231_v37 = vpack.c.bf16 %v201_v25, %v201_v25 }
  0x9d   :  { %v1079_v43 = vunpack.i.h.bf16 %v1413_v40  ;;  %v1078_v44 = vunpack.i.l.bf16 %v1413_v40  ;;  %p1237_p13 = por %p1236_p12, %p1235_p11 }
  0x9e   :  { %v145_v46 = vsel %vm141_vm4, %v1083_v42, %v1084_v41 }
  0x9f   :  { %274 = vmatpush1.bf16.msra.mxu0 %v223_v38  ;;  %v126_v45 = vsel %vm122_vm5, %v1078_v44, %v1079_v43  ;;  %v1429_v47 = vpop.permute.xlu1 %129  ;;  %p1238_p0 = pnand %p1237_p13, %p1231_p10 }
  0xa0   :  { %v1431_v48 = vpop.permute.xlu0 %110  ;;  %v218_v49 = vpack.c.bf16 %v145_v46, %v126_v45  ;;  %v146_v50 = vsel %vm141_vm4, %v1429_v47, %v1083_v42 }
  0xa1   :  { %v127_v51 = vsel %vm122_vm5, %v1431_v48, %v1078_v44 }
  0xa2   :  { %v217_v52 = vpack.c.bf16 %v146_v50, %v127_v51  ;;  %275 = vmatprep.subr.bf16.mxu0 %v218_v49  ;;  %v254_v49 = vsel %vm246_vm3, %v231_v37, 0 }
  0xa3   :  { %v1439_v53 = vpop.permute.xlu1 %1091 }
  0xa4   :  { %v1441_v54 = vpop.permute.xlu0 %1086  ;;  %276 = vmatpush1.bf16.msra.mxu0 %v217_v52  ;;  %v1094_v55 = vunpack.i.h.bf16 %v1439_v53  ;;  %v1093_v56 = vunpack.i.l.bf16 %v1439_v53 }
  0xa5   :  { %v1089_v57 = vunpack.i.h.bf16 %v1441_v54  ;;  %v1088_v58 = vunpack.i.l.bf16 %v1441_v54 }
  0xa6   :  { %v107_v60 = vsel %vm103_vm6, %v1093_v56, %v1094_v55 }
  0xa7   :  { %v88_v59 = vsel %vm84_vm7, %v1088_v58, %v1089_v57  ;;  %v1457_v61 = vpop.permute.xlu1 %91 }
  0xa8   :  { %v1459_v62 = vpop.permute.xlu0 %72  ;;  %v212_v63 = vpack.c.bf16 %v107_v60, %v88_v59  ;;  %v108_v3 = vsel %vm103_vm6, %v1457_v61, %v1093_v56 }
  0xa9   :  { %v89_v4 = vsel %vm84_vm7, %v1459_v62, %v1088_v58 }
  0xaa   :  { %v211_v6 = vpack.c.bf16 %v108_v3, %v89_v4  ;;  %277 = vmatprep.subr.bf16.mxu0 %v212_v63 }
  0xab   :  { %v1468_v11 = vpop.permute.xlu1 %51 }
  0xac   :  { %v1470_v12 = vpop.permute.xlu0 %1096  ;;  %278 = vmatpush1.bf16.msra.mxu0 %v211_v6 }
  0xad   :  { %v1099_v13 = vunpack.i.h.bf16 %v1470_v12  ;;  %v1098_v17 = vunpack.i.l.bf16 %v1470_v12 }
  0xaf   :  { %v69_v19 = vsel %vm65_vm8, %v1098_v17, %v1099_v13  ;;  %v70_v23 = vsel %vm65_vm8, %v1468_v11, %v1098_v17  ;;  %v1107_v27 = vpop.permute.xlu1 %1106 }
  0xb0   :  { %v1102_v28 = vpop.permute.xlu0 %1101  ;;  %v206_v29 = vpack.c.bf16 %v69_v19, %v1301_v0  ;;  %v205_v32 = vpack.c.bf16 %v70_v23, %v1305_v2  ;;  %v1109_v35 = vunpack.i.h.bf16 %v1107_v27  ;;  %v1108_v36 = vunpack.i.l.bf16 %v1107_v27 }
  0xb1   :  { %v1104_v33 = vunpack.i.h.bf16 %v1102_v28  ;;  %v1103_v34 = vunpack.i.l.bf16 %v1102_v28 }
  0xb2   :  { %279 = vmatprep.subr.bf16.mxu0 %v206_v29  ;;  %v162_v51 = vsel %vm160_vm2, %v1108_v36, %v1109_v35  ;;  %v163_v56 = vsel %vm160_vm2, %v1069_v20, %v1108_v36 }
  0xb3   :  { %v204_v22 = vsel %vm198_vm0, %v1104_v33, %v1058_v18  ;;  %280 = vmatpush1.bf16.msra.mxu0 %v205_v32  ;;  %v200_v0 = vsel %vm198_vm0, %v1064_v10, %v1103_v34  ;;  %v199_v2 = vsel %vm198_vm0, %v1103_v34, %v1104_v33  ;;  %v159_v42 = vpop.permute.xlu1 %158 }
  0xb4   :  { %v234_v38 = vpack.c.bf16 %v204_v22, %v204_v22  ;;  %v1112_v44 = vpop.permute.xlu0 %1111  ;;  %v232_v16 = vpack.c.bf16 %v200_v0, %v200_v0  ;;  %v233_v45 = vpack.c.bf16 %v199_v2, %v199_v2  ;;  %v161_v4 = vsel %vm160_vm2, %v1109_v35, %v159_v42 }
  0xb5   :  { %v1114_v46 = vunpack.i.h.bf16 %v1112_v44  ;;  %v1113_v18 = vunpack.i.l.bf16 %v1112_v44  ;;  %v166_v15 = vsel %vm160_vm2, %v159_v42, %v1397_v31 }
  0xb6   :  { %922 = vmatmul.mubr.msk.bf16.vlgmr.msra.gmra.mxu0 %vm242_vm9, %v1495_v26  ;;  %923 = vmatprep.subr.msk.bf16.mxu1 %vm246_vm3, %v232_v16  ;;  %v260_v50 = vsel %vm246_vm3, %v233_v45, 0 }
  0xb7   :  { %925 = vmatprep.subr.msk.bf16.mxu0 %vm246_vm3, %v234_v38  ;;  %313 = vmatpush1.bf16.msra.mxu1 %v254_v49  ;;  %v181_v52 = vsel %vm179_vm1, %v1113_v18, %v1114_v46  ;;  %v182_v58 = vsel %vm179_vm1, %v1074_v24, %v1113_v18  ;;  %v1117_v59 = vpop.permute.xlu1 %1116 }
  0xb8   :  { %v178_v60 = vpop.permute.xlu0 %177  ;;  %354 = vmatpush1.bf16.msra.mxu0 %v260_v50  ;;  %v226_v63 = vpack.c.bf16 %v181_v52, %v162_v51  ;;  %v225_v3 = vpack.c.bf16 %v182_v58, %v163_v56  ;;  %379 = vmatprep.mubr.bf16.mxu0 %v1267_v9  ;;  %v1119_v10 = vunpack.i.h.bf16 %v1117_v59  ;;  %v1118_v17 = vunpack.i.l.bf16 %v1117_v59 }
  0xb9   :  { %v180_v20 = vsel %vm179_vm1, %v1114_v46, %v178_v60  ;;  %v185_v21 = vsel %vm179_vm1, %v178_v60, %v1395_v30 }
  0xba   :  { %v227_v24 = vpack.c.bf16 %v180_v20, %v161_v4  ;;  %v228_v6 = vpack.c.bf16 %v185_v21, %v166_v15  ;;  %314 = vmatprep.subr.bf16.mxu1 %v226_v63  ;;  %v124_v31 = vsel %vm122_vm5, %v1118_v17, %v1119_v10  ;;  %v125_v30 = vsel %vm122_vm5, %v1079_v43, %v1118_v17  ;;  %v1150_v20 = vld [vmem:[#allocation5 + $0x58] sm:$0xff]   ;;  %v1156_v17 = vld [vmem:[#allocation5 + $0x40] sm:$0xff]  }
  0xbb   :  { %315 = vmatpush1.bf16.msra.mxu1 %v225_v3  ;;  %v121_v9 = vpop.permute.xlu1 %120  ;;  %v1142_v3 = vld [vmem:[#allocation5 + $0x78] sm:$0xff]  }
  0xbc   :  { %v1122_v19 = vpop.permute.xlu0 %1121  ;;  %355 = vmatprep.subr.bf16.mxu0 %v228_v6  ;;  %v123_v35 = vsel %vm122_vm5, %v1119_v10, %v121_v9  ;;  %v128_v36 = vsel %vm122_vm5, %v121_v9, %v1431_v48  ;;  %v1151_v21 = vld [vmem:[#allocation5 + $0x18] sm:$0xff]   ;;  %v1153_v6 = vld [vmem:[#allocation5 + $0x10] sm:$0xff]   ;;  %v1154_v10 = vld [vmem:[#allocation5 + $0x48] sm:$0xff]  }
  0xbd   :  { %v1124_v23 = vunpack.i.h.bf16 %v1122_v19  ;;  %v1123_v25 = vunpack.i.l.bf16 %v1122_v19  ;;  %356 = vmatpush1.bf16.msra.mxu0 %v227_v24  ;;  %v1152_v24 = vld [vmem:[#allocation5 + $0x50] sm:$0xff]   ;;  %v1157_v9 = vld [vmem:[#allocation5] sm:$0xff]   ;;  %v1158_v19 = vld [vmem:[#allocation5 + $0xf8] sm:$0xff]  }
  0xbf   :  { %v143_v27 = vsel %vm141_vm4, %v1123_v25, %v1124_v23  ;;  %v144_v28 = vsel %vm141_vm4, %v1084_v41, %v1123_v25  ;;  %v1127_v29 = vpop.permute.xlu1 %1126  ;;  %v1160_v25 = vld [vmem:[#allocation5 + $0x178] sm:$0xff]  }
  0xc0   :  { %v140_v32 = vpop.permute.xlu0 %139  ;;  %v220_v33 = vpack.c.bf16 %v143_v27, %v124_v31  ;;  %v219_v34 = vpack.c.bf16 %v144_v28, %v125_v30  ;;  %v1129_v37 = vunpack.i.h.bf16 %v1127_v29  ;;  %v1128_v22 = vunpack.i.l.bf16 %v1127_v29  ;;  %v1161_v31 = vld [vmem:[#allocation5 + $0xf0] sm:$0xff]   ;;  %v1165_v30 = vld [vmem:[#allocation5 + $0xe8] sm:$0xff]   ;;  %v1169_v29 = vld [vmem:[#allocation5 + $0xe0] sm:$0xff]  }
  0xc1   :  { %v142_v40 = vsel %vm141_vm4, %v1124_v23, %v140_v32  ;;  %v147_v39 = vsel %vm141_vm4, %v140_v32, %v1429_v47  ;;  %v1159_v23 = vld [vmem:[#allocation5 + $0xb8] sm:$0xff]   ;;  %v1163_v27 = vld [vmem:[#allocation5 + $0xb0] sm:$0xff]   ;;  %v1167_v28 = vld [vmem:[#allocation5 + $0xa8] sm:$0xff]  }
  0xc2   :  { %v221_v43 = vpack.c.bf16 %v142_v40, %v123_v35  ;;  %v222_v41 = vpack.c.bf16 %v147_v39, %v128_v36  ;;  %316 = vmatprep.subr.bf16.mxu1 %v220_v33  ;;  %v86_v48 = vsel %vm84_vm7, %v1128_v22, %v1129_v37  ;;  %v87_v47 = vsel %vm84_vm7, %v1089_v57, %v1128_v22  ;;  %v1171_v32 = vld [vmem:[#allocation5 + $0xa0] sm:$0xff]   ;;  %v1173_v33 = vld [vmem:[#allocation5 + $0xd8] sm:$0xff]   ;;  %v1177_v35 = vld [vmem:[#allocation5 + $0xd0] sm:$0xff]  }
  0xc3   :  { %317 = vmatpush1.bf16.msra.mxu1 %v219_v34  ;;  %v83_v0 = vpop.permute.xlu1 %82  ;;  %v1175_v34 = vld [vmem:[#allocation5 + $0x98] sm:$0xff]   ;;  %v1179_v36 = vld [vmem:[#allocation5 + $0x90] sm:$0xff]   ;;  %v1181_v40 = vld [vmem:[#allocation5 + $0xc8] sm:$0xff]  }
  0xc4   :  { %v1132_v2 = vpop.permute.xlu0 %1131  ;;  %357 = vmatprep.subr.bf16.mxu0 %v222_v41  ;;  %v85_v45 = vsel %vm84_vm7, %v1129_v37, %v83_v0  ;;  %v90_v46 = vsel %vm84_vm7, %v83_v0, %v1459_v62  ;;  %v1183_v39 = vld [vmem:[#allocation5 + $0x88] sm:$0xff]   ;;  %v1187_v41 = vld [vmem:[#allocation5 + $0x80] sm:$0xff]  }
  0xc5   :  { %v1134_v38 = vunpack.i.h.bf16 %v1132_v2  ;;  %v1133_v42 = vunpack.i.l.bf16 %v1132_v2  ;;  %358 = vmatpush1.bf16.msra.mxu0 %v221_v43  ;;  %v1185_v43 = vld [vmem:[#allocation5 + $0xc0] sm:$0xff]  }
  0xc7   :  { %v105_v44 = vsel %vm103_vm6, %v1133_v42, %v1134_v38  ;;  %v106_v16 = vsel %vm103_vm6, %v1094_v55, %v1133_v42  ;;  %v1137_v18 = vpop.permute.xlu1 %1136 }
  0xc8   :  { %v102_v49 = vpop.permute.xlu0 %101  ;;  %v214_v50 = vpack.c.bf16 %v105_v44, %v86_v48  ;;  %v213_v51 = vpack.c.bf16 %v106_v16, %v87_v47  ;;  %v1139_v54 = vunpack.i.h.bf16 %v1137_v18  ;;  %v1138_v52 = vunpack.i.l.bf16 %v1137_v18  ;;  %v1164_v18 = vld [vmem:[#allocation5 + $0x170] sm:$0xff]  }
  0xc9   :  { %v104_v57 = vsel %vm103_vm6, %v1134_v38, %v102_v49  ;;  %v109_v53 = vsel %vm103_vm6, %v102_v49, %v1457_v61  ;;  %v1166_v49 = vld [vmem:[#allocation5 + $0x130] sm:$0xff]  }
  0xca   :  { %v215_v55 = vpack.c.bf16 %v104_v57, %v85_v45  ;;  %v216_v56 = vpack.c.bf16 %v109_v53, %v90_v46  ;;  %318 = vmatprep.subr.bf16.mxu1 %v214_v50  ;;  %v67_v62 = vsel %vm65_vm8, %v1138_v52, %v1139_v54  ;;  %v68_v58 = vsel %vm65_vm8, %v1099_v13, %v1138_v52  ;;  %v1143_v13 = vld [vmem:[#allocation5 + $0x38] sm:$0xff]   ;;  %v1168_v50 = vld [vmem:[#allocation5 + $0x168] sm:$0xff]   ;;  %v1174_v52 = vld [vmem:[#allocation5 + $0x120] sm:$0xff]  }
  0xcb   :  { %319 = vmatpush1.bf16.msra.mxu1 %v213_v51  ;;  %v208_v60 = vpack.c.bf16 %v67_v62, %v1311_v5  ;;  %v207_v63 = vpack.c.bf16 %v68_v58, %v1303_v1  ;;  %v1144_v5 = vld [vmem:[#allocation5 + $0x70] sm:$0xff]   ;;  %v1162_v45 = vld [vmem:[#allocation5 + $0x138] sm:$0xff]   ;;  %v1170_v51 = vld [vmem:[#allocation5 + $0x128] sm:$0xff]  }
  0xcc   :  { %v62_v59 = vpop.permute.xlu0 %61  ;;  %359 = vmatprep.subr.bf16.mxu0 %v216_v56  ;;  %v1145_v1 = vld [vmem:[#allocation5 + $0x30] sm:$0xff]   ;;  %v1176_v57 = vld [vmem:[#allocation5 + $0x158] sm:$0xff]   ;;  %v1184_v58 = vld [vmem:[#allocation5 + $0x148] sm:$0xff]  }
  0xcd   :  { %v66_v61 = vsel %vm65_vm8, %v1139_v54, %v62_v59  ;;  %v71_v4 = vsel %vm65_vm8, %v62_v59, %v1468_v11  ;;  %360 = vmatpush1.bf16.msra.mxu0 %v215_v55  ;;  %320 = vmatprep.subr.bf16.mxu1 %v208_v60  ;;  %v1149_v11 = vld [vmem:[#allocation5 + $0x20] sm:$0xff]   ;;  %v1178_v53 = vld [vmem:[#allocation5 + $0x118] sm:$0xff]   ;;  %v1180_v55 = vld [vmem:[#allocation5 + $0x150] sm:$0xff]  }
  0xce   :  { %v209_v12 = vpack.c.bf16 %v66_v61, %v1328_v7  ;;  %v210_v15 = vpack.c.bf16 %v71_v4, %v1330_v8  ;;  %v1147_v7 = vld [vmem:[#allocation5 + $0x28] sm:$0xff]   ;;  %v1148_v8 = vld [vmem:[#allocation5 + $0x60] sm:$0xff]   ;;  %v1182_v56 = vld [vmem:[#allocation5 + $0x110] sm:$0xff]  }
  0xcf   :  { %321 = vmatpush1.bf16.msra.mxu1 %v207_v63  ;;  %v1172_v54 = vld [vmem:[#allocation5 + $0x160] sm:$0xff]   ;;  %v1186_v61 = vld [vmem:[#allocation5 + $0x108] sm:$0xff]  }
  0xd0   :  { %361 = vmatprep.subr.bf16.mxu0 %v210_v15  ;;  %975 = vmatprep.subr.bf16.mxu1 %v1142_v3 }
  0xd1   :  { %362 = vmatpush1.bf16.msra.mxu0 %v209_v12 }
  0xd2   :  { %924 = vmatmul.mubr.msk.bf16.vlgmr.msra.gmra.mxu1 %vm242_vm9, %v1495_v26  ;;  %997 = vmatprep.subr.bf16.mxu0 %v1158_v19 }
  0xd3   :  { %976 = vmatpush3.bf16.msra.mxu1 %v1143_v13 }
  0xd4   :  { %926 = vmatmul.mubr.msk.bf16.vlgmr.msra.gmra.mxu0 %vm242_vm9, %v1495_v26  ;;  %977 = vmatprep.subr.bf16.mxu1 %v1144_v5  ;;  %v1155_v26 = vld [vmem:[#allocation5 + $0x8] sm:$0xff]   ;;  %v240_v37 = vpop.permute.xlu1 %239  ;;  %v1188_v5 = vld [vmem:[#allocation5 + $0x140] sm:$0xff]  }
  0xd5   :  { %998 = vmatpush3.bf16.msra.mxu0 %v1159_v23 }
  0xd6   :  { %999 = vmatprep.subr.bf16.mxu0 %v1161_v31 }
  0xd7   :  { %978 = vmatpush3.bf16.msra.mxu1 %v1145_v1 }
  0xd8   :  { %979 = vmatprep.subr.bf16.mxu1 %v1146_v14 }
  0xd9   :  { %1000 = vmatpush3.bf16.msra.mxu0 %v1163_v27 }
  0xda   :  { %1001 = vmatprep.subr.bf16.mxu0 %v1165_v30 }
  0xdb   :  { %980 = vmatpush3.bf16.msra.mxu1 %v1147_v7 }
  0xdc   :  { %981 = vmatprep.subr.bf16.mxu1 %v1148_v8 }
  0xdd   :  { %1002 = vmatpush3.bf16.msra.mxu0 %v1167_v28 }
  0xde   :  { %1003 = vmatprep.subr.bf16.mxu0 %v1169_v29 }
  0xdf   :  { %982 = vmatpush3.bf16.msra.mxu1 %v1149_v11 }
  0xe0   :  { %983 = vmatprep.subr.bf16.mxu1 %v1150_v20 }
  0xe1   :  { %1004 = vmatpush3.bf16.msra.mxu0 %v1171_v32 }
  0xe2   :  { %1005 = vmatprep.subr.bf16.mxu0 %v1173_v33 }
  0xe3   :  { %984 = vmatpush3.bf16.msra.mxu1 %v1151_v21  ;;  %v1189_v21 = vld [vmem:[#allocation5 + $0x100] sm:$0xff]  }
  0xe4   :  { %985 = vmatprep.subr.bf16.mxu1 %v1152_v24 }
  0xe5   :  { %1006 = vmatpush3.bf16.msra.mxu0 %v1175_v34 }
  0xe6   :  { %1007 = vmatprep.subr.bf16.mxu0 %v1177_v35 }
  0xe7   :  { %986 = vmatpush3.bf16.msra.mxu1 %v1153_v6 }
  0xe8   :  { %987 = vmatprep.subr.bf16.mxu1 %v1154_v10 }
  0xe9   :  { %1008 = vmatpush3.bf16.msra.mxu0 %v1179_v36 }
  0xea   :  { %1009 = vmatprep.subr.bf16.mxu0 %v1181_v40 }
  0xeb   :  { %988 = vmatpush3.bf16.msra.mxu1 %v1155_v26 }
  0xec   :  { %989 = vmatprep.subr.bf16.mxu1 %v1156_v17 }
  0xed   :  { %1010 = vmatpush3.bf16.msra.mxu0 %v1183_v39 }
  0xee   :  { %1011 = vmatprep.subr.bf16.mxu0 %v1185_v43 }
  0xef   :  { %990 = vmatpush3.bf16.msra.mxu1 %v1157_v9 }
  0xf0   :  { %1019 = vmatprep.subr.bf16.mxu1 %v1160_v25 }
  0xf1   :  { %1012 = vmatpush3.bf16.msra.mxu0 %v1187_v41 }
 0x176   :  { %v299_v22 = vpop.f32.mrf.mxu0 }
 0x177   :  { %v300_v0 = vadd.f32 %v299_v22, %v240_v37 }
 0x178   :  { %v301_v2 = vpop.f32.mrf.mxu0 }
 0x179   :  { %v302_v38 = vadd.f32 %v301_v2, %v240_v37  ;;  %v388_v42 = vmax.f32 %v300_v0, 0.0 }
 0x17a   :  { %v303_v48 = vpop.f32.mrf.mxu0 }
 0x17b   :  { %v389_v44 = vmax.f32 %v302_v38, 0.0  ;;  %v394_v46 = vpack.c.bf16 %v388_v42, %v388_v42 }
 0x17c   :  { %v304_v47 = vpop.f32.mrf.mxu0 }
 0x17d   :  { %v395_v16 = vpack.c.bf16 %v389_v44, %v389_v44 }
 0x17f   :  { %816 = vmatprep.mubr.bf16.mxu1 %v395_v16 }
 0x180   :  { %817 = vmatmul.mubr.bf16.vlgmr.msra.gmra.mxu1 %v394_v46 }
 0x181   :  { %1020 = vmatpush3.bf16.msra.mxu1 %v1162_v45 }
 0x182   :  { %1021 = vmatprep.subr.bf16.mxu1 %v1164_v18 }
 0x185   :  { %1022 = vmatpush3.bf16.msra.mxu1 %v1166_v49 }
 0x186   :  { %1023 = vmatprep.subr.bf16.mxu1 %v1168_v50 }
 0x189   :  { %1024 = vmatpush3.bf16.msra.mxu1 %v1170_v51 }
 0x18a   :  { %1025 = vmatprep.subr.bf16.mxu1 %v1172_v54 }
 0x18d   :  { %1026 = vmatpush3.bf16.msra.mxu1 %v1174_v52 }
 0x18e   :  { %1027 = vmatprep.subr.bf16.mxu1 %v1176_v57 }
 0x191   :  { %1028 = vmatpush3.bf16.msra.mxu1 %v1178_v53 }
 0x192   :  { %v340_v62 = vpop.f32.mrf.mxu1  ;;  %1029 = vmatprep.subr.bf16.mxu1 %v1180_v55 }
 0x193   :  { %v341_v59 = vadd.f32 %v340_v62, %v240_v37 }
 0x194   :  { %v342_v60 = vpop.f32.mrf.mxu1  ;;  %v381_v63 = vpop.f32.mrf.mxu0 }
 0x195   :  { %v343_v3 = vadd.f32 %v342_v60, %v240_v37  ;;  %1030 = vmatpush3.bf16.msra.mxu1 %v1182_v56  ;;  %v390_v4 = vmax.f32 %v341_v59, 0.0  ;;  %v382_v12 = vadd.f32 %v381_v63, %v240_v37 }
 0x196   :  { %v344_v15 = vpop.f32.mrf.mxu1  ;;  %v383_v13 = vpop.f32.mrf.mxu0  ;;  %1031 = vmatprep.subr.bf16.mxu1 %v1184_v58 }
 0x197   :  { %v391_v1 = vmax.f32 %v343_v3, 0.0  ;;  %v384_v14 = vadd.f32 %v383_v13, %v240_v37  ;;  %v396_v24 = vpack.c.bf16 %v390_v4, %v390_v4  ;;  %v392_v6 = vmax.f32 %v382_v12, 0.0 }
 0x198   :  { %v345_v7 = vpop.f32.mrf.mxu1  ;;  %v385_v8 = vpop.f32.mrf.mxu0 }
 0x199   :  { %v397_v11 = vpack.c.bf16 %v391_v1, %v391_v1  ;;  %v393_v20 = vmax.f32 %v384_v14, 0.0  ;;  %1032 = vmatpush3.bf16.msra.mxu1 %v1186_v61  ;;  %v398_v17 = vpack.c.bf16 %v392_v6, %v392_v6 }
 0x19a   :  { %v386_v10 = vpop.f32.mrf.mxu0  ;;  %1033 = vmatprep.subr.bf16.mxu1 %v1188_v5 }
 0x19b   :  { %v399_v26 = vpack.c.bf16 %v393_v20, %v393_v20  ;;  %856 = vmatprep.mubr.bf16.mxu0 %v397_v11 }
 0x19c   :  { %857 = vmatmul.mubr.bf16.vlgmr.msra.gmra.mxu0 %v396_v24 }
 0x19d   :  { %1034 = vmatpush3.bf16.msra.mxu1 %v1189_v21  ;;  %896 = vmatprep.mubr.bf16.mxu1 %v399_v26 }
 0x1a0   :  { %897 = vmatmul.mubr.bf16.vlgmr.msra.gmra.mxu1 %v398_v17 }
 0x240   :  { %v991_v9 = vpop.f32.mrf.mxu1 }
 0x242   :  { %v992_v19 = vpop.f32.mrf.mxu1 }
 0x243   :  { %v993_v30 = vadd.f32 %v992_v19, %v991_v9 }
 0x244   :  { %v994_v23 = vpop.f32.mrf.mxu1 }
 0x246   :  { %v995_v25 = vpop.f32.mrf.mxu1 }
 0x25c   :  { %v1013_v31 = vpop.f32.mrf.mxu0 }
 0x25e   :  { %v1014_v27 = vpop.f32.mrf.mxu0 }
 0x25f   :  { %v1015_v28 = vadd.f32 %v1014_v27, %v1013_v31 }
 0x260   :  { %v1035_v29 = vpop.f32.mrf.mxu1  ;;  %v1016_v32 = vpop.f32.mrf.mxu0 }
 0x261   :  { %v859_v33 = vadd.f32 %v1015_v28, %v993_v30 }
 0x262   :  { %v1036_v34 = vpop.f32.mrf.mxu1  ;;  %v1017_v35 = vpop.f32.mrf.mxu0 }
 0x263   :  { %v1037_v36 = vadd.f32 %v1036_v34, %v1035_v29 }
 0x264   :  { %v1038_v40 = vpop.f32.mrf.mxu1 }
 0x265   :  { %v899_v39 = vadd.f32 %v1037_v36, %v859_v33 }
 0x266   :  { %v1039_v43 = vpop.f32.mrf.mxu1 }
 0x267   :  { %904 = vst [vmem:[#allocation7] sm:$0xff] %v899_v39 }
 0x268   :  { %1241 = shalt.err (!%p1238_p0)
}
 0x269   :  { %914 = dma.vmem_to_hbm [thread:$0]  %s912_s10, 128, %s1600_s4, [#allocation4]  }
 0x26a   :  { %1254 = dma.done.wait [#allocation4], 128  }
 0x26b   :  { %1255 = vsyncadd [#allocation4], 4294967168 }
 0x26c   :  { %918 = vsyncpa [#allocation3], 1 }
 0x26d   :  { %919 = vsyncpa [#allocation6], 1 }
 0x26e   :  { %920 = vsyncpa [#allocation4], 1 }

</bundles_post_ra>
